<compile_context>
chip_gen: v5e
topology: v5e:2x2
jax: 0.10.0
libtpu: 0.0.40
codegen_flags: <defaults>
</compile_context>

<pallas_src>
import jax
import jax.numpy as jnp
from jax.experimental import pallas as pl
from jax.experimental.pallas import tpu as pltpu


def _pick_tile(n, target):
    """Largest divisor of n that is <= target and a multiple of 8 (else n)."""
    if n <= target:
        return n
    for t in range(target, 7, -1):
        if n % t == 0 and t % 8 == 0:
            return t
    return n


def gcn2bn1lin2mlp3_forward(x, a_hat, params, *, row_tile=256, k_tile=1024):
    """x: (N, F) node features; a_hat: (N, N) normalized dense adjacency.

    row_tile / k_tile are per-generation tuning knobs (larger A_hat tiles on
    v6e's 128 MiB VMEM, smaller on v7x's 64 MiB / v5e's 16 MiB scoped default).
    """
    N, F = x.shape
    H = params["w1"].shape[1]
    C = params["wm3"].shape[1]
    f32 = jnp.float32
    bf16 = jnp.bfloat16

    TM = _pick_tile(N, row_tile)
    TK = _pick_tile(N, k_tile)
    nI, nK = N // TM, N // TK
    inv_n = 1.0 / float(N)

    # ---------------- host-side folds (pure affine algebra) ----------------
    # BN: xn = xhat*gamma + beta  =>  xn @ W1 = xhat @ (diag(gamma)@W1) + beta@W1
    w1g = (params["w1"] * params["bn_gamma"][:, None]).astype(f32)          # (F,H)
    bw1 = (params["bn_beta"][None, :] @ params["w1"]).astype(f32)           # (1,H)
    b1 = params["b1"].reshape(1, -1).astype(f32)                            # (1,H)
    w2 = params["w2"].astype(f32)                                           # (H,H)
    b2 = params["b2"].reshape(1, -1).astype(f32)                            # (1,H)
    # mpl1->mpl2->mpl3 with no nonlinearity == one affine map
    w_head = (params["wm1"] @ params["wm2"] @ params["wm3"]).astype(f32)    # (H,C)
    b_head = ((params["bm1"] @ params["wm2"] + params["bm2"]) @ params["wm3"]
              + params["bm3"]).reshape(1, -1).astype(f32)                   # (1,C)
    a_bf16 = a_hat.astype(bf16)                                             # (N,N)

    vmem_limit = 32 * 1024 * 1024
    cp_red = pltpu.CompilerParams(dimension_semantics=("arbitrary",),
                                  vmem_limit_bytes=vmem_limit)
    cp_par = pltpu.CompilerParams(dimension_semantics=("parallel",),
                                  vmem_limit_bytes=vmem_limit)
    cp_agg = pltpu.CompilerParams(dimension_semantics=("parallel", "arbitrary"),
                                  vmem_limit_bytes=vmem_limit)

    # ---------------- 1) BatchNorm batch statistics (training mode) ----------------
    def bn_stats_kernel(x_ref, stat_ref):
        i = pl.program_id(0)

        @pl.when(i == 0)
        def _():
            stat_ref[...] = jnp.zeros_like(stat_ref)

        xt = x_ref[...].astype(f32)
        stat_ref[0:1, :] = stat_ref[0:1, :] + jnp.sum(xt, axis=0, keepdims=True)
        stat_ref[1:2, :] = stat_ref[1:2, :] + jnp.sum(xt * xt, axis=0, keepdims=True)

        @pl.when(i == pl.num_programs(0) - 1)
        def _():
            mean = stat_ref[0:1, :] * inv_n
            var = stat_ref[1:2, :] * inv_n - mean * mean     # biased variance
            stat_ref[0:1, :] = mean
            stat_ref[1:2, :] = jax.lax.rsqrt(var + 1e-5)

    stats = pl.pallas_call(
        bn_stats_kernel,
        out_shape=jax.ShapeDtypeStruct((2, F), f32),
        grid=(nI,),
        in_specs=[pl.BlockSpec((TM, F), lambda i: (i, 0))],
        out_specs=pl.BlockSpec((2, F), lambda i: (0, 0)),
        compiler_params=cp_red,
    )(x)

    # ------- 2) BN normalize + gamma-folded conv1 feature transform: h1_pre -------
    def bn_lin_kernel(x_ref, stat_ref, w_ref, bw_ref, o_ref):
        xt = x_ref[...].astype(f32)
        xn = (xt - stat_ref[0:1, :]) * stat_ref[1:2, :]
        h = jnp.dot(xn, w_ref[...], preferred_element_type=f32) + bw_ref[...]
        o_ref[...] = h.astype(o_ref.dtype)

    h1_pre = pl.pallas_call(
        bn_lin_kernel,
        out_shape=jax.ShapeDtypeStruct((N, H), bf16),
        grid=(nI,),
        in_specs=[pl.BlockSpec((TM, F), lambda i: (i, 0)),
                  pl.BlockSpec((2, F), lambda i: (0, 0)),
                  pl.BlockSpec((F, H), lambda i: (0, 0)),
                  pl.BlockSpec((1, H), lambda i: (0, 0))],
        out_specs=pl.BlockSpec((TM, H), lambda i: (i, 0)),
        compiler_params=cp_par,
    )(x, stats, w1g, bw1)

    # ------- 3) layer 1 aggregation:  relu(A_hat @ h1_pre + b1) @ W2  -> h2_pre -------
    def agg1_kernel(a_ref, h_ref, b_ref, w_ref, o_ref, acc_ref):
        k = pl.program_id(1)

        @pl.when(k == 0)
        def _():
            acc_ref[...] = jnp.zeros_like(acc_ref)

        acc_ref[...] += jnp.dot(a_ref[...], h_ref[...],          # bf16 x bf16, f32 acc
                                preferred_element_type=f32)

        @pl.when(k == pl.num_programs(1) - 1)
        def _():
            h = jnp.maximum(acc_ref[...] + b_ref[...], 0.0)
            # TODO(synk): F.dropout(p) is the identity here (deterministic inference
            # semantics); the reference in training mode would randomly zero units.
            o_ref[...] = jnp.dot(h, w_ref[...],
                                 preferred_element_type=f32).astype(o_ref.dtype)

    h2_pre = pl.pallas_call(
        agg1_kernel,
        out_shape=jax.ShapeDtypeStruct((N, H), bf16),
        grid=(nI, nK),
        in_specs=[pl.BlockSpec((TM, TK), lambda i, k: (i, k)),
                  pl.BlockSpec((TK, H), lambda i, k: (k, 0)),
                  pl.BlockSpec((1, H), lambda i, k: (0, 0)),
                  pl.BlockSpec((H, H), lambda i, k: (0, 0))],
        out_specs=pl.BlockSpec((TM, H), lambda i, k: (i, 0)),
        scratch_shapes=[pltpu.VMEM((TM, H), f32)],
        compiler_params=cp_agg,
    )(a_bf16, h1_pre, b1, w2)

    # ------- 4) layer 2 aggregation + fused MLP head + log_softmax -------
    def agg2_kernel(a_ref, h_ref, b_ref, wh_ref, bh_ref, o_ref, acc_ref):
        k = pl.program_id(1)

        @pl.when(k == 0)
        def _():
            acc_ref[...] = jnp.zeros_like(acc_ref)

        acc_ref[...] += jnp.dot(a_ref[...], h_ref[...],
                                preferred_element_type=f32)

        @pl.when(k == pl.num_programs(1) - 1)
        def _():
            h = jnp.maximum(acc_ref[...] + b_ref[...], 0.0)
            logits = jnp.dot(h, wh_ref[...], preferred_element_type=f32) + bh_ref[...]
            m = jnp.max(logits, axis=1, keepdims=True)
            z = logits - m
            lse = jnp.log(jnp.sum(jnp.exp(z), axis=1, keepdims=True))
            o_ref[...] = (z - lse).astype(o_ref.dtype)

    out = pl.pallas_call(
        agg2_kernel,
        out_shape=jax.ShapeDtypeStruct((N, C), f32),
        grid=(nI, nK),
        in_specs=[pl.BlockSpec((TM, TK), lambda i, k: (i, k)),
                  pl.BlockSpec((TK, H), lambda i, k: (k, 0)),
                  pl.BlockSpec((1, H), lambda i, k: (0, 0)),
                  pl.BlockSpec((H, C), lambda i, k: (0, 0)),
                  pl.BlockSpec((1, C), lambda i, k: (0, 0))],
        out_specs=pl.BlockSpec((TM, C), lambda i, k: (i, 0)),
        scratch_shapes=[pltpu.VMEM((TM, H), f32)],
        compiler_params=cp_agg,
    )(a_bf16, h2_pre, b2, w_head, b_head)

    return out


def build_normalized_adjacency(edge_index, num_nodes):
    """GCN normalization: D^-1/2 (A + I) D^-1/2, symmetric edges, one self loop/node."""
    src, dst = edge_index
    a = jnp.zeros((num_nodes, num_nodes), jnp.float32)
    a = a.at[dst, src].set(1.0)
    a = a.at[src, dst].set(1.0)                         # undirected graph
    a = jnp.maximum(a, jnp.eye(num_nodes, dtype=jnp.float32))  # self loops (weight 1)
    deg = jnp.sum(a, axis=1)
    d_inv_sqrt = jnp.where(deg > 0, 1.0 / jnp.sqrt(deg), 0.0)
    return a * d_inv_sqrt[:, None] * d_inv_sqrt[None, :]


def init_params(key, features_dim, hidden_dim, n_classes):
    ks = jax.random.split(key, 10)

    def w(k, i, o, scale=0.1):
        return (scale * jax.random.normal(k, (i, o))).astype(jnp.float32)

    return {
        "bn_gamma": jnp.ones((features_dim,), jnp.float32),
        "bn_beta": jnp.zeros((features_dim,), jnp.float32),
        "w1": w(ks[0], features_dim, hidden_dim),
        "b1": (0.01 * jax.random.normal(ks[1], (hidden_dim,))).astype(jnp.float32),
        "w2": w(ks[2], hidden_dim, hidden_dim),
        "b2": (0.01 * jax.random.normal(ks[3], (hidden_dim,))).astype(jnp.float32),
        "wm1": w(ks[4], hidden_dim, hidden_dim),
        "bm1": jnp.zeros((hidden_dim,), jnp.float32),
        "wm2": w(ks[5], hidden_dim, hidden_dim),
        "bm2": jnp.zeros((hidden_dim,), jnp.float32),
        "wm3": w(ks[6], hidden_dim, n_classes),
        "bm3": jnp.zeros((n_classes,), jnp.float32),
    }


if __name__ == "__main__":
    key = jax.random.PRNGKey(0)
    k_x, k_e, k_p = jax.random.split(key, 3)

    N = 64            # nodes
    FEATURES = 16     # features_dim
    HIDDEN = 32       # hidden_dim
    CLASSES = 8       # n_classes
    E = 128           # directed edges (symmetrized)

    x = jax.random.normal(k_x, (N, FEATURES), jnp.float32)
    edge_index = jax.random.randint(k_e, (2, E), 0, N)
    a_hat = build_normalized_adjacency(edge_index, N)

    params = init_params(k_p, FEATURES, HIDDEN, CLASSES)

    forward = jax.jit(gcn2bn1lin2mlp3_forward)
    out = forward(x, a_hat, params)
    out = jax.block_until_ready(out)

    assert out.shape == (N, CLASSES)
    # rows of log_softmax must exp-sum to 1
    assert jnp.allclose(jnp.sum(jnp.exp(out), axis=1), 1.0, atol=1e-3)
    print("KERNEL_OK")
</pallas_src>

<mosaic_0001>
module attributes {stable_mosaic.version = 11 : i64} {
  func.func @bn_lin_kernel(%arg0: i32, %arg1: memref<64x16xf32, #tpu.memory_space<vmem>>, %arg2: memref<2x16xf32, #tpu.memory_space<vmem>>, %arg3: memref<16x32xf32, #tpu.memory_space<vmem>>, %arg4: memref<1x32xf32, #tpu.memory_space<vmem>>, %arg5: memref<64x32xbf16, #tpu.memory_space<vmem>>) attributes {dimension_semantics = [#tpu.dimension_semantics<parallel>], iteration_bounds = array<i64: 1>, scalar_prefetch = 0 : i64, scratch_operands = 0 : i64, tpu.core_type = #tpu.core_type<tc>, window_params = [{transform_indices = @transform_0, window_bounds = array<i64: 64, 16>}, {pipeline_mode = #tpu.pipeline_mode<synchronous>, transform_indices = @transform_1, window_bounds = array<i64: 2, 16>}, {pipeline_mode = #tpu.pipeline_mode<synchronous>, transform_indices = @transform_2, window_bounds = array<i64: 16, 32>}, {pipeline_mode = #tpu.pipeline_mode<synchronous>, transform_indices = @transform_3, window_bounds = array<i64: 1, 32>}, {transform_indices = @transform_4, window_bounds = array<i64: 64, 32>}]} {
    %c0 = arith.constant 0 : index
    %c0_0 = arith.constant 0 : index
    %0 = vector.load %arg1[%c0, %c0_0] : memref<64x16xf32, #tpu.memory_space<vmem>>, vector<64x16xf32>
    %c0_1 = arith.constant 0 : index
    %c0_2 = arith.constant 0 : index
    %1 = vector.load %arg2[%c0_1, %c0_2] : memref<2x16xf32, #tpu.memory_space<vmem>>, vector<1x16xf32>
    %2 = vector.broadcast %1 : vector<1x16xf32> to vector<64x16xf32>
    %3 = arith.subf %0, %2 : vector<64x16xf32>
    %c1 = arith.constant 1 : index
    %c0_3 = arith.constant 0 : index
    %4 = vector.load %arg2[%c1, %c0_3] : memref<2x16xf32, #tpu.memory_space<vmem>>, vector<1x16xf32>
    %5 = vector.broadcast %4 : vector<1x16xf32> to vector<64x16xf32>
    %6 = arith.mulf %3, %5 : vector<64x16xf32>
    %c0_4 = arith.constant 0 : index
    %c0_5 = arith.constant 0 : index
    %7 = vector.load %arg3[%c0_4, %c0_5] : memref<16x32xf32, #tpu.memory_space<vmem>>, vector<16x32xf32>
    %cst = arith.constant dense<0.000000e+00> : vector<64x32xf32>
    %8 = tpu.matmul %6, %7, %cst {dimension_numbers = #tpu.dot_dimension_numbers<[1], [0], [0], [1], [0, 0, 1, 1], [], []>} : vector<64x16xf32>, vector<16x32xf32>, vector<64x32xf32> -> vector<64x32xf32>
    %c0_6 = arith.constant 0 : index
    %c0_7 = arith.constant 0 : index
    %9 = vector.load %arg4[%c0_6, %c0_7] : memref<1x32xf32, #tpu.memory_space<vmem>>, vector<1x32xf32>
    %10 = vector.broadcast %9 : vector<1x32xf32> to vector<64x32xf32>
    %11 = arith.addf %8, %10 : vector<64x32xf32>
    %12 = arith.truncf %11 : vector<64x32xf32> to vector<64x32xbf16>
    %c0_8 = arith.constant 0 : index
    %c0_9 = arith.constant 0 : index
    %13 = vector.load %arg5[%c0_8, %c0_9] : memref<64x32xbf16, #tpu.memory_space<vmem>>, vector<64x32xbf16>
    tpu.vector_store %arg5[%c0_8, %c0_9], %12 {strides = array<i32>} : memref<64x32xbf16, #tpu.memory_space<vmem>>, vector<64x32xbf16>,
    return
  }
  func.func @transform_0(%arg0: i32) -> (i32, i32) {
    %c0_i32 = arith.constant 0 : i32
    %c0_i32_0 = arith.constant 0 : i32
    return %arg0, %c0_i32 : i32, i32
  }
  func.func @transform_1(%arg0: i32) -> (i32, i32) {
    %c0_i32 = arith.constant 0 : i32
    %c0_i32_0 = arith.constant 0 : i32
    %c0_i32_1 = arith.constant 0 : i32
    return %c0_i32, %c0_i32_0 : i32, i32
  }
  func.func @transform_2(%arg0: i32) -> (i32, i32) {
    %c0_i32 = arith.constant 0 : i32
    %c0_i32_0 = arith.constant 0 : i32
    %c0_i32_1 = arith.constant 0 : i32
    return %c0_i32, %c0_i32_0 : i32, i32
  }
  func.func @transform_3(%arg0: i32) -> (i32, i32) {
    %c0_i32 = arith.constant 0 : i32
    %c0_i32_0 = arith.constant 0 : i32
    %c0_i32_1 = arith.constant 0 : i32
    return %c0_i32, %c0_i32_0 : i32, i32
  }
  func.func @transform_4(%arg0: i32) -> (i32, i32) {
    %c0_i32 = arith.constant 0 : i32
    %c0_i32_0 = arith.constant 0 : i32
    return %arg0, %c0_i32 : i32, i32
  }
}

module attributes {stable_mosaic.version = 11 : i64} {
  func.func @bn_stats_kernel(%arg0: i32, %arg1: memref<64x16xf32, #tpu.memory_space<vmem>>, %arg2: memref<2x16xf32, #tpu.memory_space<vmem>>) attributes {dimension_semantics = [#tpu.dimension_semantics<arbitrary>], iteration_bounds = array<i64: 1>, scalar_prefetch = 0 : i64, scratch_operands = 0 : i64, tpu.core_type = #tpu.core_type<tc>, window_params = [{transform_indices = @transform_0, window_bounds = array<i64: 64, 16>}, {pipeline_mode = #tpu.pipeline_mode<synchronous>, transform_indices = @transform_1, window_bounds = array<i64: 2, 16>}]} {
    %c0_i32 = arith.constant 0 : i32
    %0 = arith.cmpi eq, %arg0, %c0_i32 : i32
    %1 = arith.extui %0 : i1 to i32
    %c0_i32_0 = arith.constant 0 : i32
    %2 = arith.cmpi ne, %1, %c0_i32_0 : i32
    scf.if %2 {
      %cst_12 = arith.constant 0.000000e+00 : f32
      %18 = vector.broadcast %cst_12 : f32 to vector<2x16xf32>
      %c0_13 = arith.constant 0 : index
      %c0_14 = arith.constant 0 : index
      %19 = vector.load %arg2[%c0_13, %c0_14] : memref<2x16xf32, #tpu.memory_space<vmem>>, vector<2x16xf32>
      tpu.vector_store %arg2[%c0_13, %c0_14], %18 {strides = array<i32>} : memref<2x16xf32, #tpu.memory_space<vmem>>, vector<2x16xf32>,
    } else {
    }
    %c0 = arith.constant 0 : index
    %c0_1 = arith.constant 0 : index
    %3 = vector.load %arg1[%c0, %c0_1] : memref<64x16xf32, #tpu.memory_space<vmem>>, vector<64x16xf32>
    %c0_2 = arith.constant 0 : index
    %c0_3 = arith.constant 0 : index
    %4 = vector.load %arg2[%c0_2, %c0_3] : memref<2x16xf32, #tpu.memory_space<vmem>>, vector<1x16xf32>
    %cst = arith.constant dense<0.000000e+00> : vector<16xf32>
    %5 = vector.multi_reduction <add>, %3, %cst [0] : vector<64x16xf32> to vector<16xf32>
    %6 = vector.shape_cast %5 : vector<16xf32> to vector<1x16xf32>
    %7 = arith.addf %4, %6 : vector<1x16xf32>
    %c0_4 = arith.constant 0 : index
    %c0_5 = arith.constant 0 : index
    %8 = vector.load %arg2[%c0_4, %c0_5] : memref<2x16xf32, #tpu.memory_space<vmem>>, vector<1x16xf32>
    tpu.vector_store %arg2[%c0_4, %c0_5], %7 {strides = array<i32>} : memref<2x16xf32, #tpu.memory_space<vmem>>, vector<1x16xf32>,
    %c1 = arith.constant 1 : index
    %c0_6 = arith.constant 0 : index
    %9 = vector.load %arg2[%c1, %c0_6] : memref<2x16xf32, #tpu.memory_space<vmem>>, vector<1x16xf32>
    %10 = arith.mulf %3, %3 : vector<64x16xf32>
    %cst_7 = arith.constant dense<0.000000e+00> : vector<16xf32>
    %11 = vector.multi_reduction <add>, %10, %cst_7 [0] : vector<64x16xf32> to vector<16xf32>
    %12 = vector.shape_cast %11 : vector<16xf32> to vector<1x16xf32>
    %13 = arith.addf %9, %12 : vector<1x16xf32>
    %c1_8 = arith.constant 1 : index
    %c0_9 = arith.constant 0 : index
    %14 = vector.load %arg2[%c1_8, %c0_9] : memref<2x16xf32, #tpu.memory_space<vmem>>, vector<1x16xf32>
    tpu.vector_store %arg2[%c1_8, %c0_9], %13 {strides = array<i32>} : memref<2x16xf32, #tpu.memory_space<vmem>>, vector<1x16xf32>,
    %c0_i32_10 = arith.constant 0 : i32
    %15 = arith.cmpi eq, %arg0, %c0_i32_10 : i32
    %16 = arith.extui %15 : i1 to i32
    %c0_i32_11 = arith.constant 0 : i32
    %17 = arith.cmpi ne, %16, %c0_i32_11 : i32
    scf.if %17 {
      %c0_12 = arith.constant 0 : index
      %c0_13 = arith.constant 0 : index
      %18 = vector.load %arg2[%c0_12, %c0_13] : memref<2x16xf32, #tpu.memory_space<vmem>>, vector<1x16xf32>
      %cst_14 = arith.constant 1.562500e-02 : f32
      %19 = vector.broadcast %cst_14 : f32 to vector<1x16xf32>
      %20 = arith.mulf %18, %19 : vector<1x16xf32>
      %c1_15 = arith.constant 1 : index
      %c0_16 = arith.constant 0 : index
      %21 = vector.load %arg2[%c1_15, %c0_16] : memref<2x16xf32, #tpu.memory_space<vmem>>, vector<1x16xf32>
      %cst_17 = arith.constant 1.562500e-02 : f32
      %22 = vector.broadcast %cst_17 : f32 to vector<1x16xf32>
      %23 = arith.mulf %21, %22 : vector<1x16xf32>
      %24 = arith.mulf %20, %20 : vector<1x16xf32>
      %25 = arith.subf %23, %24 : vector<1x16xf32>
      %c0_18 = arith.constant 0 : index
      %c0_19 = arith.constant 0 : index
      %26 = vector.load %arg2[%c0_18, %c0_19] : memref<2x16xf32, #tpu.memory_space<vmem>>, vector<1x16xf32>
      tpu.vector_store %arg2[%c0_18, %c0_19], %20 {strides = array<i32>} : memref<2x16xf32, #tpu.memory_space<vmem>>, vector<1x16xf32>,
      %cst_20 = arith.constant 9.99999974E-6 : f32
      %27 = vector.broadcast %cst_20 : f32 to vector<1x16xf32>
      %28 = arith.addf %25, %27 : vector<1x16xf32>
      %29 = math.rsqrt %28 : vector<1x16xf32>
      %c1_21 = arith.constant 1 : index
      %c0_22 = arith.constant 0 : index
      %30 = vector.load %arg2[%c1_21, %c0_22] : memref<2x16xf32, #tpu.memory_space<vmem>>, vector<1x16xf32>
      tpu.vector_store %arg2[%c1_21, %c0_22], %29 {strides = array<i32>} : memref<2x16xf32, #tpu.memory_space<vmem>>, vector<1x16xf32>,
    } else {
    }
    return
  }
  func.func @transform_0(%arg0: i32) -> (i32, i32) {
    %c0_i32 = arith.constant 0 : i32
    %c0_i32_0 = arith.constant 0 : i32
    return %arg0, %c0_i32 : i32, i32
  }
  func.func @transform_1(%arg0: i32) -> (i32, i32) {
    %c0_i32 = arith.constant 0 : i32
    %c0_i32_0 = arith.constant 0 : i32
    %c0_i32_1 = arith.constant 0 : i32
    return %c0_i32, %c0_i32_0 : i32, i32
  }
}

module attributes {stable_mosaic.version = 11 : i64} {
  func.func @agg1_kernel(%arg0: i32, %arg1: i32, %arg2: memref<64x64xbf16, #tpu.memory_space<vmem>>, %arg3: memref<64x32xbf16, #tpu.memory_space<vmem>>, %arg4: memref<1x32xf32, #tpu.memory_space<vmem>>, %arg5: memref<32x32xf32, #tpu.memory_space<vmem>>, %arg6: memref<64x32xbf16, #tpu.memory_space<vmem>>, %arg7: memref<64x32xf32, #tpu.memory_space<vmem>>) attributes {dimension_semantics = [#tpu.dimension_semantics<parallel>, #tpu.dimension_semantics<arbitrary>], iteration_bounds = array<i64: 1, 1>, scalar_prefetch = 0 : i64, scratch_operands = 1 : i64, tpu.core_type = #tpu.core_type<tc>, window_params = [{transform_indices = @transform_0, window_bounds = array<i64: 64, 64>}, {transform_indices = @transform_1, window_bounds = array<i64: 64, 32>}, {pipeline_mode = #tpu.pipeline_mode<synchronous>, transform_indices = @transform_2, window_bounds = array<i64: 1, 32>}, {pipeline_mode = #tpu.pipeline_mode<synchronous>, transform_indices = @transform_3, window_bounds = array<i64: 32, 32>}, {transform_indices = @transform_4, window_bounds = array<i64: 64, 32>}]} {
    %c0_i32 = arith.constant 0 : i32
    %0 = arith.cmpi eq, %arg1, %c0_i32 : i32
    %1 = arith.extui %0 : i1 to i32
    %c0_i32_0 = arith.constant 0 : i32
    %2 = arith.cmpi ne, %1, %c0_i32_0 : i32
    scf.if %2 {
      %cst_10 = arith.constant 0.000000e+00 : f32
      %12 = vector.broadcast %cst_10 : f32 to vector<64x32xf32>
      %c0_11 = arith.constant 0 : index
      %c0_12 = arith.constant 0 : index
      %13 = vector.load %arg7[%c0_11, %c0_12] : memref<64x32xf32, #tpu.memory_space<vmem>>, vector<64x32xf32>
      tpu.vector_store %arg7[%c0_11, %c0_12], %12 {strides = array<i32>} : memref<64x32xf32, #tpu.memory_space<vmem>>, vector<64x32xf32>,
    } else {
    }
    %c0 = arith.constant 0 : index
    %c0_1 = arith.constant 0 : index
    %3 = vector.load %arg7[%c0, %c0_1] : memref<64x32xf32, #tpu.memory_space<vmem>>, vector<64x32xf32>
    %c0_2 = arith.constant 0 : index
    %c0_3 = arith.constant 0 : index
    %4 = vector.load %arg2[%c0_2, %c0_3] : memref<64x64xbf16, #tpu.memory_space<vmem>>, vector<64x64xbf16>
    %c0_4 = arith.constant 0 : index
    %c0_5 = arith.constant 0 : index
    %5 = vector.load %arg3[%c0_4, %c0_5] : memref<64x32xbf16, #tpu.memory_space<vmem>>, vector<64x32xbf16>
    %cst = arith.constant dense<0.000000e+00> : vector<64x32xf32>
    %6 = tpu.matmul %4, %5, %cst {dimension_numbers = #tpu.dot_dimension_numbers<[1], [0], [0], [1], [0, 0, 1, 1], [], []>} : vector<64x64xbf16>, vector<64x32xbf16>, vector<64x32xf32> -> vector<64x32xf32>
    %7 = arith.addf %3, %6 : vector<64x32xf32>
    %c0_6 = arith.constant 0 : index
    %c0_7 = arith.constant 0 : index
    %8 = vector.load %arg7[%c0_6, %c0_7] : memref<64x32xf32, #tpu.memory_space<vmem>>, vector<64x32xf32>
    tpu.vector_store %arg7[%c0_6, %c0_7], %7 {strides = array<i32>} : memref<64x32xf32, #tpu.memory_space<vmem>>, vector<64x32xf32>,
    %c0_i32_8 = arith.constant 0 : i32
    %9 = arith.cmpi eq, %arg1, %c0_i32_8 : i32
    %10 = arith.extui %9 : i1 to i32
    %c0_i32_9 = arith.constant 0 : i32
    %11 = arith.cmpi ne, %10, %c0_i32_9 : i32
    scf.if %11 {
      %c0_10 = arith.constant 0 : index
      %c0_11 = arith.constant 0 : index
      %12 = vector.load %arg7[%c0_10, %c0_11] : memref<64x32xf32, #tpu.memory_space<vmem>>, vector<64x32xf32>
      %c0_12 = arith.constant 0 : index
      %c0_13 = arith.constant 0 : index
      %13 = vector.load %arg4[%c0_12, %c0_13] : memref<1x32xf32, #tpu.memory_space<vmem>>, vector<1x32xf32>
      %14 = vector.broadcast %13 : vector<1x32xf32> to vector<64x32xf32>
      %15 = arith.addf %12, %14 : vector<64x32xf32>
      %cst_14 = arith.constant 0.000000e+00 : f32
      %16 = vector.broadcast %cst_14 : f32 to vector<64x32xf32>
      %17 = arith.maximumf %15, %16 : vector<64x32xf32>
      %c0_15 = arith.constant 0 : index
      %c0_16 = arith.constant 0 : index
      %18 = vector.load %arg5[%c0_15, %c0_16] : memref<32x32xf32, #tpu.memory_space<vmem>>, vector<32x32xf32>
      %cst_17 = arith.constant dense<0.000000e+00> : vector<64x32xf32>
      %19 = tpu.matmul %17, %18, %cst_17 {dimension_numbers = #tpu.dot_dimension_numbers<[1], [0], [0], [1], [0, 0, 1, 1], [], []>} : vector<64x32xf32>, vector<32x32xf32>, vector<64x32xf32> -> vector<64x32xf32>
      %20 = arith.truncf %19 : vector<64x32xf32> to vector<64x32xbf16>
      %c0_18 = arith.constant 0 : index
      %c0_19 = arith.constant 0 : index
      %21 = vector.load %arg6[%c0_18, %c0_19] : memref<64x32xbf16, #tpu.memory_space<vmem>>, vector<64x32xbf16>
      tpu.vector_store %arg6[%c0_18, %c0_19], %20 {strides = array<i32>} : memref<64x32xbf16, #tpu.memory_space<vmem>>, vector<64x32xbf16>,
    } else {
    }
    return
  }
  func.func @transform_0(%arg0: i32, %arg1: i32) -> (i32, i32) {
    %c0_i32 = arith.constant 0 : i32
    return %arg0, %arg1 : i32, i32
  }
  func.func @transform_1(%arg0: i32, %arg1: i32) -> (i32, i32) {
    %c0_i32 = arith.constant 0 : i32
    %c0_i32_0 = arith.constant 0 : i32
    return %arg1, %c0_i32 : i32, i32
  }
  func.func @transform_2(%arg0: i32, %arg1: i32) -> (i32, i32) {
    %c0_i32 = arith.constant 0 : i32
    %c0_i32_0 = arith.constant 0 : i32
    %c0_i32_1 = arith.constant 0 : i32
    return %c0_i32, %c0_i32_0 : i32, i32
  }
  func.func @transform_3(%arg0: i32, %arg1: i32) -> (i32, i32) {
    %c0_i32 = arith.constant 0 : i32
    %c0_i32_0 = arith.constant 0 : i32
    %c0_i32_1 = arith.constant 0 : i32
    return %c0_i32, %c0_i32_0 : i32, i32
  }
  func.func @transform_4(%arg0: i32, %arg1: i32) -> (i32, i32) {
    %c0_i32 = arith.constant 0 : i32
    %c0_i32_0 = arith.constant 0 : i32
    return %arg0, %c0_i32 : i32, i32
  }
}

module attributes {stable_mosaic.version = 11 : i64} {
  func.func @agg2_kernel(%arg0: i32, %arg1: i32, %arg2: memref<64x64xbf16, #tpu.memory_space<vmem>>, %arg3: memref<64x32xbf16, #tpu.memory_space<vmem>>, %arg4: memref<1x32xf32, #tpu.memory_space<vmem>>, %arg5: memref<32x8xf32, #tpu.memory_space<vmem>>, %arg6: memref<1x8xf32, #tpu.memory_space<vmem>>, %arg7: memref<64x8xf32, #tpu.memory_space<vmem>>, %arg8: memref<64x32xf32, #tpu.memory_space<vmem>>) attributes {dimension_semantics = [#tpu.dimension_semantics<parallel>, #tpu.dimension_semantics<arbitrary>], iteration_bounds = array<i64: 1, 1>, scalar_prefetch = 0 : i64, scratch_operands = 1 : i64, tpu.core_type = #tpu.core_type<tc>, window_params = [{transform_indices = @transform_0, window_bounds = array<i64: 64, 64>}, {transform_indices = @transform_1, window_bounds = array<i64: 64, 32>}, {pipeline_mode = #tpu.pipeline_mode<synchronous>, transform_indices = @transform_2, window_bounds = array<i64: 1, 32>}, {pipeline_mode = #tpu.pipeline_mode<synchronous>, transform_indices = @transform_3, window_bounds = array<i64: 32, 8>}, {pipeline_mode = #tpu.pipeline_mode<synchronous>, transform_indices = @transform_4, window_bounds = array<i64: 1, 8>}, {transform_indices = @transform_5, window_bounds = array<i64: 64, 8>}]} {
    %c0_i32 = arith.constant 0 : i32
    %0 = arith.cmpi eq, %arg1, %c0_i32 : i32
    %1 = arith.extui %0 : i1 to i32
    %c0_i32_0 = arith.constant 0 : i32
    %2 = arith.cmpi ne, %1, %c0_i32_0 : i32
    scf.if %2 {
      %cst_10 = arith.constant 0.000000e+00 : f32
      %12 = vector.broadcast %cst_10 : f32 to vector<64x32xf32>
      %c0_11 = arith.constant 0 : index
      %c0_12 = arith.constant 0 : index
      %13 = vector.load %arg8[%c0_11, %c0_12] : memref<64x32xf32, #tpu.memory_space<vmem>>, vector<64x32xf32>
      tpu.vector_store %arg8[%c0_11, %c0_12], %12 {strides = array<i32>} : memref<64x32xf32, #tpu.memory_space<vmem>>, vector<64x32xf32>,
    } else {
    }
    %c0 = arith.constant 0 : index
    %c0_1 = arith.constant 0 : index
    %3 = vector.load %arg8[%c0, %c0_1] : memref<64x32xf32, #tpu.memory_space<vmem>>, vector<64x32xf32>
    %c0_2 = arith.constant 0 : index
    %c0_3 = arith.constant 0 : index
    %4 = vector.load %arg2[%c0_2, %c0_3] : memref<64x64xbf16, #tpu.memory_space<vmem>>, vector<64x64xbf16>
    %c0_4 = arith.constant 0 : index
    %c0_5 = arith.constant 0 : index
    %5 = vector.load %arg3[%c0_4, %c0_5] : memref<64x32xbf16, #tpu.memory_space<vmem>>, vector<64x32xbf16>
    %cst = arith.constant dense<0.000000e+00> : vector<64x32xf32>
    %6 = tpu.matmul %4, %5, %cst {dimension_numbers = #tpu.dot_dimension_numbers<[1], [0], [0], [1], [0, 0, 1, 1], [], []>} : vector<64x64xbf16>, vector<64x32xbf16>, vector<64x32xf32> -> vector<64x32xf32>
    %7 = arith.addf %3, %6 : vector<64x32xf32>
    %c0_6 = arith.constant 0 : index
    %c0_7 = arith.constant 0 : index
    %8 = vector.load %arg8[%c0_6, %c0_7] : memref<64x32xf32, #tpu.memory_space<vmem>>, vector<64x32xf32>
    tpu.vector_store %arg8[%c0_6, %c0_7], %7 {strides = array<i32>} : memref<64x32xf32, #tpu.memory_space<vmem>>, vector<64x32xf32>,
    %c0_i32_8 = arith.constant 0 : i32
    %9 = arith.cmpi eq, %arg1, %c0_i32_8 : i32
    %10 = arith.extui %9 : i1 to i32
    %c0_i32_9 = arith.constant 0 : i32
    %11 = arith.cmpi ne, %10, %c0_i32_9 : i32
    scf.if %11 {
      %c0_10 = arith.constant 0 : index
      %c0_11 = arith.constant 0 : index
      %12 = vector.load %arg8[%c0_10, %c0_11] : memref<64x32xf32, #tpu.memory_space<vmem>>, vector<64x32xf32>
      %c0_12 = arith.constant 0 : index
      %c0_13 = arith.constant 0 : index
      %13 = vector.load %arg4[%c0_12, %c0_13] : memref<1x32xf32, #tpu.memory_space<vmem>>, vector<1x32xf32>
      %14 = vector.broadcast %13 : vector<1x32xf32> to vector<64x32xf32>
      %15 = arith.addf %12, %14 : vector<64x32xf32>
      %cst_14 = arith.constant 0.000000e+00 : f32
      %16 = vector.broadcast %cst_14 : f32 to vector<64x32xf32>
      %17 = arith.maximumf %15, %16 : vector<64x32xf32>
      %c0_15 = arith.constant 0 : index
      %c0_16 = arith.constant 0 : index
      %18 = vector.load %arg5[%c0_15, %c0_16] : memref<32x8xf32, #tpu.memory_space<vmem>>, vector<32x8xf32>
      %cst_17 = arith.constant dense<0.000000e+00> : vector<64x8xf32>
      %19 = tpu.matmul %17, %18, %cst_17 {dimension_numbers = #tpu.dot_dimension_numbers<[1], [0], [0], [1], [0, 0, 1, 1], [], []>} : vector<64x32xf32>, vector<32x8xf32>, vector<64x8xf32> -> vector<64x8xf32>
      %c0_18 = arith.constant 0 : index
      %c0_19 = arith.constant 0 : index
      %20 = vector.load %arg6[%c0_18, %c0_19] : memref<1x8xf32, #tpu.memory_space<vmem>>, vector<1x8xf32>
      %21 = vector.broadcast %20 : vector<1x8xf32> to vector<64x8xf32>
      %22 = arith.addf %19, %21 : vector<64x8xf32>
      %cst_20 = arith.constant dense<0xFF800000> : vector<64xf32>
      %23 = vector.multi_reduction <maximumf>, %22, %cst_20 [1] : vector<64x8xf32> to vector<64xf32>
      %24 = vector.shape_cast %23 : vector<64xf32> to vector<64x1xf32>
      %25 = vector.broadcast %24 : vector<64x1xf32> to vector<64x8xf32>
      %26 = arith.subf %22, %25 : vector<64x8xf32>
      %27 = math.exp %26 : vector<64x8xf32>
      %cst_21 = arith.constant dense<0.000000e+00> : vector<64xf32>
      %28 = vector.multi_reduction <add>, %27, %cst_21 [1] : vector<64x8xf32> to vector<64xf32>
      %29 = vector.shape_cast %28 : vector<64xf32> to vector<64x1xf32>
      %30 = math.log %29 : vector<64x1xf32>
      %31 = vector.broadcast %30 : vector<64x1xf32> to vector<64x8xf32>
      %32 = arith.subf %26, %31 : vector<64x8xf32>
      %c0_22 = arith.constant 0 : index
      %c0_23 = arith.constant 0 : index
      %33 = vector.load %arg7[%c0_22, %c0_23] : memref<64x8xf32, #tpu.memory_space<vmem>>, vector<64x8xf32>
      tpu.vector_store %arg7[%c0_22, %c0_23], %32 {strides = array<i32>} : memref<64x8xf32, #tpu.memory_space<vmem>>, vector<64x8xf32>,
    } else {
    }
    return
  }
  func.func @transform_0(%arg0: i32, %arg1: i32) -> (i32, i32) {
    %c0_i32 = arith.constant 0 : i32
    return %arg0, %arg1 : i32, i32
  }
  func.func @transform_1(%arg0: i32, %arg1: i32) -> (i32, i32) {
    %c0_i32 = arith.constant 0 : i32
    %c0_i32_0 = arith.constant 0 : i32
    return %arg1, %c0_i32 : i32, i32
  }
  func.func @transform_2(%arg0: i32, %arg1: i32) -> (i32, i32) {
    %c0_i32 = arith.constant 0 : i32
    %c0_i32_0 = arith.constant 0 : i32
    %c0_i32_1 = arith.constant 0 : i32
    return %c0_i32, %c0_i32_0 : i32, i32
  }
  func.func @transform_3(%arg0: i32, %arg1: i32) -> (i32, i32) {
    %c0_i32 = arith.constant 0 : i32
    %c0_i32_0 = arith.constant 0 : i32
    %c0_i32_1 = arith.constant 0 : i32
    return %c0_i32, %c0_i32_0 : i32, i32
  }
  func.func @transform_4(%arg0: i32, %arg1: i32) -> (i32, i32) {
    %c0_i32 = arith.constant 0 : i32
    %c0_i32_0 = arith.constant 0 : i32
    %c0_i32_1 = arith.constant 0 : i32
    return %c0_i32, %c0_i32_0 : i32, i32
  }
  func.func @transform_5(%arg0: i32, %arg1: i32) -> (i32, i32) {
    %c0_i32 = arith.constant 0 : i32
    %c0_i32_0 = arith.constant 0 : i32
    return %arg0, %c0_i32 : i32, i32
  }
}

</mosaic_0001>

<bundles_post_ra>
// kernel: gcn2bn1lin2mlp3_forward.5
= control target key start
LH: loop header
LB: loop body
LE: loop exit
PB: predicated region body
PF: predicated region fallthrough
CT: control target
= control target key end

     0   :  { %vm51_vm0 = vcmask 130048   ;;  %vm125_vm1 = vcmask 257024   ;;  %s259_s2 = inlined_call_operand.vmem [shape: f32[16,32], index: 2, kind: input, shape index: {}]   ;;  %s260_s0 = inlined_call_operand.vmem [shape: f32[64,16], index: 0, kind: input, shape index: {}]   ;;  %s261_s1 = inlined_call_operand.vmem [shape: f32[2,16], index: 1, kind: input, shape index: {}]   ;;  %s262_s3 = inlined_call_operand.vmem [shape: f32[1,32], index: 3, kind: input, shape index: {}]   ;;  %s263_s4 = inlined_call_operand.vmem [shape: bf16[64,32], index: 4, kind: output, shape index: {}]  }
   0x1   :  { %v46_v0 = vld [vmem:[%s259_s2 + $0x8] sm:$0xff]  ;;  %v45_v1 = vld [vmem:[%s259_s2] sm:$0xff]  ;;  %v23_v5 = vld [vmem:[%s260_s0 + $0x30] sm:$0xff] }
   0x2   :  { %v21_v2 = vld [vmem:[%s260_s0 + $0x20] sm:$0xff]  ;;  %147 = vmatpush.msra.mxu2 %v46_v0  ;;  %148 = vmatpush.msra.mxu3 %v46_v0  ;;  %v19_v10 = vld [vmem:[%s260_s0 + $0x10] sm:$0xff]  ;;  %v22_v12 = vld [vmem:[%s260_s0 + $0x28] sm:$0xff] }
   0x3   :  { %v152_v3 = vld [vmem:[%s261_s1] ss:$0 sm:$0xff]  ;;  %v153_v4 = vld [vmem:[%s261_s1 + $0x1] ss:$0 sm:$0xff]  ;;  %90 = vmatpush.msra.mxu0 %v46_v0  ;;  %146 = vmatpush.msra.mxu1 %v46_v0  ;;  %v24_v13 = vld [vmem:[%s260_s0 + $0x38] sm:$0xff] }
   0x4   :  { %v17_v6 = vld [vmem:[%s260_s0] sm:$0xff]  ;;  %150 = vmatpush.msra.mxu2 %v45_v1  ;;  %151 = vmatpush.msra.mxu3 %v45_v1  ;;  %v31_v7 = vsub.f32 %v21_v2, %v152_v3  ;;  %v33_v8 = vsub.f32 %v23_v5, %v152_v3  ;;  %v29_v11 = vsub.f32 %v19_v10, %v152_v3  ;;  %v18_v17 = vld [vmem:[%s260_s0 + $0x8] sm:$0xff]  ;;  %v20_v18 = vld [vmem:[%s260_s0 + $0x18] sm:$0xff] }
   0x5   :  { %v27_v9 = vsub.f32 %v17_v6, %v152_v3  ;;  %91 = vmatpush.msra.mxu0 %v45_v1  ;;  %149 = vmatpush.msra.mxu1 %v45_v1  ;;  %v32_v20 = vsub.f32 %v22_v12, %v152_v3  ;;  %v34_v21 = vsub.f32 %v24_v13, %v152_v3  ;;  %v154_v28 = vld [vmem:[%s262_s3] ss:$0 sm:$0xff] }
   0x6   :  { %v41_v14 = vmul.f32 %v153_v4, %v31_v7  ;;  %v43_v15 = vmul.f32 %v153_v4, %v33_v8  ;;  %v39_v19 = vmul.f32 %v153_v4, %v29_v11  ;;  %v28_v22 = vsub.f32 %v18_v17, %v152_v3 }
   0x7   :  { %v37_v16 = vmul.f32 %v153_v4, %v27_v9  ;;  %v30_v23 = vsub.f32 %v20_v18, %v152_v3  ;;  %v42_v24 = vmul.f32 %v153_v4, %v32_v20  ;;  %v44_v25 = vmul.f32 %v153_v4, %v34_v21 }
   0x8   :  { %142 = vmatmul.msk.f32.vlgmr.msra.gmra.mxu2 %vm51_vm0, %v41_v14  ;;  %144 = vmatmul.msk.f32.vlgmr.msra.gmra.mxu3 %vm51_vm0, %v43_v15  ;;  %v38_v26 = vmul.f32 %v153_v4, %v28_v22 }
   0x9   :  { %138 = vmatmul.msk.f32.vlgmr.msra.gmra.mxu0 %vm51_vm0, %v37_v16  ;;  %140 = vmatmul.msk.f32.vlgmr.msra.gmra.mxu1 %vm51_vm0, %v39_v19  ;;  %v40_v27 = vmul.f32 %v153_v4, %v30_v23 }
  0x10   :  { %143 = vmatmul.msk.f32.gmra.mxu2 %vm51_vm0, %v42_v24  ;;  %145 = vmatmul.msk.f32.gmra.mxu3 %vm51_vm0, %v44_v25 }
  0x11   :  { %139 = vmatmul.msk.f32.gmra.mxu0 %vm51_vm0, %v38_v26  ;;  %141 = vmatmul.msk.f32.gmra.mxu1 %vm51_vm0, %v40_v27 }
  0x86   :  { %v93_v29 = vpop.f32.mrf.mxu0  ;;  %v99_v30 = vpop.f32.mrf.mxu1 }
  0x87   :  { %v94_v31 = vadd.f32 %v154_v28, %v93_v29  ;;  %v100_v32 = vadd.f32 %v154_v28, %v99_v30 }
  0x89   :  { %v117_v33 = vpack.c.bf16 %v94_v31, %v94_v31  ;;  %v119_v34 = vpack.c.bf16 %v100_v32, %v100_v32 }
  0x8b   :  { %126 = vst.msk [vmem:[%s263_s4] sm:$0xf] %vm125_vm1, %v117_v33  ;;  %v105_v35 = vpop.f32.mrf.mxu2  ;;  %v111_v36 = vpop.f32.mrf.mxu3 }
  0x8c   :  { %128 = vst.msk [vmem:[%s263_s4 + $0x8] sm:$0xf] %vm125_vm1, %v119_v34  ;;  %v106_v37 = vadd.f32 %v154_v28, %v105_v35  ;;  %v112_v38 = vadd.f32 %v154_v28, %v111_v36 }
  0x8e   :  { %v121_v39 = vpack.c.bf16 %v106_v37, %v106_v37  ;;  %v123_v40 = vpack.c.bf16 %v112_v38, %v112_v38  ;;  %v96_v41 = vpop.f32.mrf.mxu0  ;;  %v102_v42 = vpop.f32.mrf.mxu1 }
  0x8f   :  { %v97_v43 = vadd.f32 %v154_v28, %v96_v41  ;;  %v103_v44 = vadd.f32 %v154_v28, %v102_v42 }
  0x90   :  { %130 = vst.msk [vmem:[%s263_s4 + $0x10] sm:$0xf] %vm125_vm1, %v121_v39 }
  0x91   :  { %132 = vst.msk [vmem:[%s263_s4 + $0x18] sm:$0xf] %vm125_vm1, %v123_v40  ;;  %v118_v45 = vpack.c.bf16 %v97_v43, %v97_v43  ;;  %v120_v46 = vpack.c.bf16 %v103_v44, %v103_v44 }
  0x93   :  { %127 = vst.msk [vmem:[%s263_s4 + $0x4] sm:$0xf] %vm125_vm1, %v118_v45  ;;  %v108_v47 = vpop.f32.mrf.mxu2  ;;  %v114_v48 = vpop.f32.mrf.mxu3 }
  0x94   :  { %129 = vst.msk [vmem:[%s263_s4 + $0xc] sm:$0xf] %vm125_vm1, %v120_v46  ;;  %v109_v49 = vadd.f32 %v154_v28, %v108_v47  ;;  %v115_v50 = vadd.f32 %v154_v28, %v114_v48 }
  0x96   :  { %v122_v51 = vpack.c.bf16 %v109_v49, %v109_v49  ;;  %v124_v52 = vpack.c.bf16 %v115_v50, %v115_v50 }
  0x98   :  { %131 = vst.msk [vmem:[%s263_s4 + $0x14] sm:$0xf] %vm125_vm1, %v122_v51 }
  0x99   :  { %133 = vst.msk [vmem:[%s263_s4 + $0x1c] sm:$0xf] %vm125_vm1, %v124_v52 }

// kernel: gcn2bn1lin2mlp3_forward.4
= control target key start
LH: loop header
LB: loop body
LE: loop exit
PB: predicated region body
PF: predicated region fallthrough
CT: control target
= control target key end

     0   :  { %vm12_vm0 = vcmask 123904   ;;  %vm23_vm1 = vcmask 130048   ;;  %v109_v0 = vmov 0.0   ;;  %vm46_vm2 = vcmask 122880   ;;  %s191_s1 = inlined_call_operand.vmem [shape: f32[2,16], index: 1, kind: output, shape index: {}]   ;;  %s192_s0 = inlined_call_operand.vmem [shape: f32[64,16], index: 0, kind: input, shape index: {}]  }
   0x1   :  { %13 = vst.msk [vmem:[%s191_s1] sm:$0x3] %vm12_vm0, %v109_v0  ;;  %v14_v1 = vld [vmem:[%s192_s0] sm:$0xff]  ;;  %v15_v2 = vld [vmem:[%s192_s0 + $0x8] sm:$0xff]  ;;  %v16_v3 = vld [vmem:[%s192_s0 + $0x10] sm:$0xff] }
   0x2   :  { %v17_v4 = vld [vmem:[%s192_s0 + $0x18] sm:$0xff]  ;;  %v24_v5 = vsel %vm23_vm1, %v14_v1, 0.0  ;;  %v25_v6 = vsel %vm23_vm1, %v15_v2, 0.0  ;;  %v27_v7 = vsel %vm23_vm1, %v16_v3, 0.0  ;;  %v49_v8 = vmul.f32 %v14_v1, %v14_v1  ;;  %v18_v9 = vld [vmem:[%s192_s0 + $0x20] sm:$0xff]  ;;  %v19_v14 = vld [vmem:[%s192_s0 + $0x28] sm:$0xff] }
   0x3   :  { %v26_v10 = vadd.f32 %v25_v6, %v24_v5  ;;  %v29_v11 = vsel %vm23_vm1, %v17_v4, 0.0  ;;  %v50_v12 = vmul.f32 %v15_v2, %v15_v2  ;;  %v51_v13 = vmul.f32 %v16_v3, %v16_v3  ;;  %v20_v21 = vld [vmem:[%s192_s0 + $0x30] sm:$0xff]  ;;  %v21_v28 = vld [vmem:[%s192_s0 + $0x38] sm:$0xff] }
   0x4   :  { %v52_v16 = vmul.f32 %v17_v4, %v17_v4  ;;  %v31_v17 = vsel %vm23_vm1, %v18_v9, 0.0  ;;  %v53_v18 = vmul.f32 %v18_v9, %v18_v9  ;;  %v57_v19 = vsel %vm23_vm1, %v49_v8, 0.0 }
   0x5   :  { %v28_v15 = vadd.f32 %v27_v7, %v26_v10  ;;  %v58_v20 = vsel %vm23_vm1, %v50_v12, 0.0  ;;  %v60_v24 = vsel %vm23_vm1, %v51_v13, 0.0  ;;  %v33_v25 = vsel %vm23_vm1, %v19_v14, 0.0 }
   0x6   :  { %v59_v23 = vadd.f32 %v58_v20, %v57_v19  ;;  %v54_v26 = vmul.f32 %v19_v14, %v19_v14  ;;  %v62_v27 = vsel %vm23_vm1, %v52_v16, 0.0  ;;  %v35_v31 = vsel %vm23_vm1, %v20_v21, 0.0 }
   0x7   :  { %v30_v22 = vadd.f32 %v29_v11, %v28_v15  ;;  %v55_v32 = vmul.f32 %v20_v21, %v20_v21  ;;  %v64_v33 = vsel %vm23_vm1, %v53_v18, 0.0  ;;  %v37_v36 = vsel %vm23_vm1, %v21_v28, 0.0 }
   0x8   :  { %v61_v30 = vadd.f32 %v60_v24, %v59_v23  ;;  %v56_v37 = vmul.f32 %v21_v28, %v21_v28  ;;  %v66_v38 = vsel %vm23_vm1, %v54_v26, 0.0  ;;  %v22_v55 = vld [vmem:[%s191_s1] sm:$0x1]  ;;  %v48_v61 = vld [vmem:[%s191_s1 + $0x1] sm:$0x1] }
   0x9   :  { %v32_v29 = vadd.f32 %v31_v17, %v30_v22  ;;  %v68_v41 = vsel %vm23_vm1, %v55_v32, 0.0 }
   0xa   :  { %v63_v35 = vadd.f32 %v62_v27, %v61_v30  ;;  %v70_v44 = vsel %vm23_vm1, %v56_v37, 0.0 }
   0xb   :  { %v34_v34 = vadd.f32 %v33_v25, %v32_v29 }
   0xc   :  { %v65_v40 = vadd.f32 %v64_v33, %v63_v35 }
   0xd   :  { %v36_v39 = vadd.f32 %v35_v31, %v34_v34 }
   0xe   :  { %v67_v43 = vadd.f32 %v66_v38, %v65_v40 }
   0xf   :  { %v38_v42 = vadd.f32 %v37_v36, %v36_v39 }
  0x10   :  { %v69_v46 = vadd.f32 %v68_v41, %v67_v43 }
  0x11   :  { %v39_v45 = vrot.slane %v38_v42, 4 }
  0x12   :  { %v71_v48 = vadd.f32 %v70_v44, %v69_v46 }
  0x13   :  { %v40_v47 = vadd.f32 %v39_v45, %v38_v42 }
  0x14   :  { %v72_v50 = vrot.slane %v71_v48, 4 }
  0x15   :  { %v41_v49 = vrot.slane %v40_v47, 2 }
  0x16   :  { %v73_v52 = vadd.f32 %v72_v50, %v71_v48 }
  0x17   :  { %v42_v51 = vadd.f32 %v41_v49, %v40_v47 }
  0x18   :  { %v74_v54 = vrot.slane %v73_v52, 2 }
  0x19   :  { %v43_v53 = vrot.slane %v42_v51, 1 }
  0x1a   :  { %v75_v57 = vadd.f32 %v74_v54, %v73_v52 }
  0x1b   :  { %v44_v56 = vadd.f32 %v43_v53, %v42_v51 }
  0x1c   :  { %v76_v59 = vrot.slane %v75_v57, 1 }
  0x1d   :  { %v45_v58 = vadd.f32 %v44_v56, %v22_v55 }
  0x1e   :  { %v77_v60 = vadd.f32 %v76_v59, %v75_v57 }
  0x1f   :  { %47 = vst.msk [vmem:[%s191_s1] sm:$0x1] %vm46_vm2, %v45_v58 }
  0x20   :  { %v78_v62 = vadd.f32 %v77_v60, %v48_v61 }
  0x22   :  { %79 = vst.msk [vmem:[%s191_s1 + $0x1] sm:$0x1] %vm46_vm2, %v78_v62 }
  0x26   :  { %v83_v63 = vld [vmem:[%s191_s1] sm:$0x1] }
  0x27   :  { %v84_v0 = vmul.f32 0.015625, %v83_v63 }
  0x29   :  { %v87_v1 = vmul.f32 %v84_v0, %v84_v0  ;;  %89 = vst.msk [vmem:[%s191_s1] sm:$0x1] %vm46_vm2, %v84_v0  ;;  %v85_v2 = vld [vmem:[%s191_s1 + $0x1] sm:$0x1] }
  0x2a   :  { %v86_v3 = vmul.f32 0.015625, %v85_v2 }
  0x2c   :  { %v88_v4 = vsub.f32 %v86_v3, %v87_v1 }
  0x2e   :  { %v90_v5 = vadd.f32 1e-05, %v88_v4 }
  0x30   :  { %107 = vrsqrt.f32 %v90_v5  ;;  %vm97_vm4 = vweird.f32 %v90_v5 }
  0x36   :  { %v108_v6 = vpop.eup %107 }
  0x37   :  { %v92_v7 = vmul.f32 %v108_v6, %v90_v5  ;;  %vm98_vm3 = vweird.f32 %v108_v6 }
  0x38   :  { %vm99_vm5 = vmor %vm97_vm4, %vm98_vm3 }
  0x39   :  { %v93_v8 = vmul.f32 %v108_v6, %v92_v7 }
  0x3b   :  { %v94_v9 = vmul.f32 0.5, %v93_v8 }
  0x3d   :  { %v95_v10 = vsub.f32 1.5, %v94_v9 }
  0x3f   :  { %v96_v11 = vmul.f32 %v108_v6, %v95_v10 }
  0x41   :  { %v100_v12 = vsel %vm99_vm5, %v108_v6, %v96_v11 }
  0x42   :  { %101 = vst.msk [vmem:[%s191_s1 + $0x1] sm:$0x1] %vm46_vm2, %v100_v12 }

// kernel: gcn2bn1lin2mlp3_forward.6
= control target key start
LH: loop header
LB: loop body
LE: loop exit
PB: predicated region body
PF: predicated region fallthrough
CT: control target
= control target key end

     0   :  { %vm22_vm0 = vcmask 261120   ;;  %v341_v2 = vmov 0.0   ;;  %vm99_vm1 = vcmask 523264   ;;  %vm266_vm2 = vcmask 257024   ;;  %s462_s1 = inlined_call_operand.vmem [shape: bf16[64,32], index: 1, kind: input, shape index: {}]   ;;  %s463_s0 = inlined_call_operand.vmem [shape: bf16[64,64], index: 0, kind: input, shape index: {}]   ;;  %s464_s2 = inlined_call_operand.vmem [shape: f32[1,32], index: 2, kind: input, shape index: {}]   ;;  %s465_s3 = inlined_call_operand.vmem [shape: f32[32,32], index: 3, kind: input, shape index: {}]   ;;  %s466_s4 = inlined_call_operand.vmem [shape: bf16[64,32], index: 4, kind: output, shape index: {}]  }
   0x1   :  { %v330_v0 = vld [vmem:[%s462_s1 + $0x18] sm:$0xff]  ;;  %v329_v1 = vld [vmem:[%s462_s1 + $0x10] sm:$0xff]  ;;  %23 = vst.msk [vmem:[#allocation2] sm:$0xff] %vm22_vm0, %v341_v2  ;;  %v328_v3 = vld [vmem:[%s462_s1 + $0x8] sm:$0xff] }
   0x2   :  { %116 = vmatpush.bf16.msra.mxu0 %v330_v0  ;;  %331 = vmatpush.bf16.msra.mxu2 %v330_v0  ;;  %24 = vst.msk [vmem:[#allocation2 + $0x8] sm:$0xff] %vm22_vm0, %v341_v2  ;;  %v327_v4 = vld [vmem:[%s462_s1] sm:$0xff]  ;;  %v325_v6 = vld [vmem:[%s463_s0 + $0x10] sm:$0xff]  ;;  %v324_v7 = vld [vmem:[%s463_s0 + $0x8] sm:$0xff] }
   0x3   :  { %25 = vst.msk [vmem:[#allocation2 + $0x10] sm:$0xff] %vm22_vm0, %v341_v2  ;;  %v323_v5 = vld [vmem:[%s463_s0] sm:$0xff]  ;;  %v326_v8 = vld [vmem:[%s463_s0 + $0x18] sm:$0xff]  ;;  %v191_v10 = vld [vmem:[%s465_s3 + $0x10] sm:$0xff] }
   0x4   :  { %26 = vst.msk [vmem:[#allocation2 + $0x18] sm:$0xff] %vm22_vm0, %v341_v2  ;;  %v192_v9 = vld [vmem:[%s465_s3 + $0x18] sm:$0xff]  ;;  %v190_v11 = vld [vmem:[%s465_s3 + $0x8] sm:$0xff]  ;;  %v189_v12 = vld [vmem:[%s465_s3] sm:$0xff] }
   0x5   :  { %27 = vst.msk [vmem:[#allocation2 + $0x20] sm:$0xff] %vm22_vm0, %v341_v2  ;;  %229 = vmatpush.msra.mxu1 %v192_v9  ;;  %335 = vmatpush.msra.mxu3 %v192_v9  ;;  %v340_v20 = vld [vmem:[%s464_s2] ss:$0 sm:$0xff] }
   0x6   :  { %117 = vmatpush.bf16.msra.mxu0 %v329_v1  ;;  %332 = vmatpush.bf16.msra.mxu2 %v329_v1  ;;  %28 = vst.msk [vmem:[#allocation2 + $0x28] sm:$0xff] %vm22_vm0, %v341_v2 }
   0x7   :  { %29 = vst.msk [vmem:[#allocation2 + $0x30] sm:$0xff] %vm22_vm0, %v341_v2  ;;  %230 = vmatpush.msra.mxu1 %v191_v10  ;;  %336 = vmatpush.msra.mxu3 %v191_v10 }
   0x8   :  { %30 = vst.msk [vmem:[#allocation2 + $0x38] sm:$0xff] %vm22_vm0, %v341_v2  ;;  %v31_v13 = vld [vmem:[#allocation2] sm:$0xff] }
   0x9   :  { %231 = vmatpush.msra.mxu1 %v190_v11  ;;  %337 = vmatpush.msra.mxu3 %v190_v11  ;;  %v32_v18 = vld [vmem:[#allocation2 + $0x8] sm:$0xff] }
   0xa   :  { %118 = vmatpush.bf16.msra.mxu0 %v328_v3  ;;  %333 = vmatpush.bf16.msra.mxu2 %v328_v3  ;;  %v33_v28 = vld [vmem:[#allocation2 + $0x10] sm:$0xff] }
   0xb   :  { %232 = vmatpush.msra.mxu1 %v189_v12  ;;  %338 = vmatpush.msra.mxu3 %v189_v12  ;;  %v34_v37 = vld [vmem:[#allocation2 + $0x18] sm:$0xff] }
   0xc   :  { %v35_v16 = vld [vmem:[#allocation2 + $0x20] sm:$0xff] }
   0xd   :  { %v36_v25 = vld [vmem:[#allocation2 + $0x28] sm:$0xff] }
   0xe   :  { %119 = vmatpush.bf16.msra.mxu0 %v327_v4  ;;  %334 = vmatpush.bf16.msra.mxu2 %v327_v4  ;;  %v37_v34 = vld [vmem:[#allocation2 + $0x30] sm:$0xff] }
   0xf   :  { %v38_v46 = vld [vmem:[#allocation2 + $0x38] sm:$0xff] }
  0x11   :  { %311 = vmatmul.msk.bf16.vlgmr.msra.gmra.mxu0 %vm99_vm1, %v323_v5  ;;  %313 = vmatmul.msk.bf16.vlgmr.msra.gmra.mxu2 %vm99_vm1, %v325_v6 }
  0x21   :  { %312 = vmatmul.msk.bf16.gmra.mxu0 %vm99_vm1, %v324_v7  ;;  %314 = vmatmul.msk.bf16.gmra.mxu2 %vm99_vm1, %v326_v8 }
  0x8e   :  { %v121_v14 = vpop.f32.mrf.mxu0 }
  0x8f   :  { %v141_v15 = vadd.f32 %v121_v14, %v31_v13 }
  0x91   :  { %150 = vst.msk [vmem:[#allocation2] sm:$0xff] %vm22_vm0, %v141_v15 }
  0x94   :  { %v131_v17 = vpop.f32.mrf.mxu2 }
  0x95   :  { %v145_v19 = vadd.f32 %v131_v17, %v35_v16 }
  0x96   :  { %v123_v21 = vpop.f32.mrf.mxu0 }
  0x97   :  { %154 = vst.msk [vmem:[#allocation2 + $0x20] sm:$0xff] %vm22_vm0, %v145_v19  ;;  %v142_v22 = vadd.f32 %v123_v21, %v32_v18 }
  0x98   :  { %v161_v23 = vld [vmem:[#allocation2] sm:$0xff] }
  0x99   :  { %151 = vst.msk [vmem:[#allocation2 + $0x8] sm:$0xff] %vm22_vm0, %v142_v22  ;;  %v173_v24 = vadd.f32 %v340_v20, %v161_v23 }
  0x9b   :  { %v181_v26 = vmax.f32 %v173_v24, 0.0 }
  0x9c   :  { %v133_v27 = vpop.f32.mrf.mxu2 }
  0x9d   :  { %v146_v29 = vadd.f32 %v133_v27, %v36_v25  ;;  %315 = vmatmul.msk.f32.vlgmr.msra.gmra.mxu1 %vm22_vm0, %v181_v26 }
  0x9e   :  { %v126_v30 = vpop.f32.mrf.mxu0  ;;  %v165_v56 = vld [vmem:[#allocation2 + $0x20] sm:$0xff] }
  0x9f   :  { %155 = vst.msk [vmem:[#allocation2 + $0x28] sm:$0xff] %vm22_vm0, %v146_v29  ;;  %v143_v31 = vadd.f32 %v126_v30, %v33_v28  ;;  %v177_v59 = vadd.f32 %v340_v20, %v165_v56 }
  0xa0   :  { %v162_v32 = vld [vmem:[#allocation2 + $0x8] sm:$0xff] }
  0xa1   :  { %152 = vst.msk [vmem:[#allocation2 + $0x10] sm:$0xff] %vm22_vm0, %v143_v31  ;;  %v174_v33 = vadd.f32 %v340_v20, %v162_v32  ;;  %v185_v61 = vmax.f32 %v177_v59, 0.0 }
  0xa3   :  { %v182_v35 = vmax.f32 %v174_v33, 0.0 }
  0xa4   :  { %v136_v36 = vpop.f32.mrf.mxu2 }
  0xa5   :  { %v147_v38 = vadd.f32 %v136_v36, %v37_v34  ;;  %316 = vmatmul.msk.f32.gmra.mxu1 %vm22_vm0, %v182_v35 }
  0xa6   :  { %v128_v39 = vpop.f32.mrf.mxu0  ;;  %v166_v40 = vld [vmem:[#allocation2 + $0x28] sm:$0xff] }
  0xa7   :  { %156 = vst.msk [vmem:[#allocation2 + $0x30] sm:$0xff] %vm22_vm0, %v147_v38  ;;  %v144_v41 = vadd.f32 %v128_v39, %v34_v37  ;;  %v178_v42 = vadd.f32 %v340_v20, %v166_v40 }
  0xa8   :  { %v163_v43 = vld [vmem:[#allocation2 + $0x10] sm:$0xff] }
  0xa9   :  { %153 = vst.msk [vmem:[#allocation2 + $0x18] sm:$0xff] %vm22_vm0, %v144_v41  ;;  %v186_v44 = vmax.f32 %v178_v42, 0.0  ;;  %v175_v45 = vadd.f32 %v340_v20, %v163_v43 }
  0xab   :  { %320 = vmatmul.msk.f32.vlgmr.msra.gmra.mxu3 %vm22_vm0, %v186_v44  ;;  %v183_v47 = vmax.f32 %v175_v45, 0.0 }
  0xac   :  { %v138_v48 = vpop.f32.mrf.mxu2 }
  0xad   :  { %v148_v49 = vadd.f32 %v138_v48, %v38_v46  ;;  %317 = vmatmul.msk.f32.gmra.mxu1 %vm22_vm0, %v183_v47 }
  0xae   :  { %v167_v50 = vld [vmem:[#allocation2 + $0x30] sm:$0xff] }
  0xaf   :  { %157 = vst.msk [vmem:[#allocation2 + $0x38] sm:$0xff] %vm22_vm0, %v148_v49  ;;  %v179_v51 = vadd.f32 %v340_v20, %v167_v50 }
  0xb0   :  { %v164_v52 = vld [vmem:[#allocation2 + $0x18] sm:$0xff] }
  0xb1   :  { %v187_v53 = vmax.f32 %v179_v51, 0.0  ;;  %v176_v54 = vadd.f32 %v340_v20, %v164_v52 }
  0xb3   :  { %321 = vmatmul.msk.f32.gmra.mxu3 %vm22_vm0, %v187_v53  ;;  %v184_v55 = vmax.f32 %v176_v54, 0.0 }
  0xb5   :  { %318 = vmatmul.msk.f32.gmra.mxu1 %vm22_vm0, %v184_v55 }
  0xb6   :  { %v168_v57 = vld [vmem:[#allocation2 + $0x38] sm:$0xff] }
  0xb7   :  { %v180_v58 = vadd.f32 %v340_v20, %v168_v57 }
  0xb9   :  { %v188_v60 = vmax.f32 %v180_v58, 0.0 }
  0xbb   :  { %322 = vmatmul.msk.f32.gmra.mxu3 %vm22_vm0, %v188_v60 }
  0xbd   :  { %319 = vmatmul.msk.f32.gmra.mxu1 %vm22_vm0, %v185_v61 }
 0x11a   :  { %v234_v62 = vpop.f32.mrf.mxu1 }
 0x11b   :  { %v258_v63 = vpack.c.bf16 %v234_v62, %v234_v62 }
 0x11d   :  { %267 = vst.msk [vmem:[%s466_s4] sm:$0xf] %vm266_vm2, %v258_v63 }
 0x122   :  { %v237_v0 = vpop.f32.mrf.mxu1 }
 0x123   :  { %v259_v1 = vpack.c.bf16 %v237_v0, %v237_v0 }
 0x125   :  { %268 = vst.msk [vmem:[%s466_s4 + $0x4] sm:$0xf] %vm266_vm2, %v259_v1 }
 0x12a   :  { %v240_v2 = vpop.f32.mrf.mxu1 }
 0x12b   :  { %v260_v3 = vpack.c.bf16 %v240_v2, %v240_v2 }
 0x12d   :  { %269 = vst.msk [vmem:[%s466_s4 + $0x8] sm:$0xf] %vm266_vm2, %v260_v3 }
 0x12e   :  { %v249_v4 = vpop.f32.mrf.mxu3 }
 0x12f   :  { %v263_v5 = vpack.c.bf16 %v249_v4, %v249_v4 }
 0x131   :  { %272 = vst.msk [vmem:[%s466_s4 + $0x14] sm:$0xf] %vm266_vm2, %v263_v5 }
 0x132   :  { %v243_v6 = vpop.f32.mrf.mxu1 }
 0x133   :  { %v261_v7 = vpack.c.bf16 %v243_v6, %v243_v6 }
 0x135   :  { %270 = vst.msk [vmem:[%s466_s4 + $0xc] sm:$0xf] %vm266_vm2, %v261_v7 }
 0x136   :  { %v252_v8 = vpop.f32.mrf.mxu3 }
 0x137   :  { %v264_v9 = vpack.c.bf16 %v252_v8, %v252_v8 }
 0x139   :  { %273 = vst.msk [vmem:[%s466_s4 + $0x18] sm:$0xf] %vm266_vm2, %v264_v9 }
 0x13a   :  { %v246_v10 = vpop.f32.mrf.mxu1 }
 0x13b   :  { %v262_v11 = vpack.c.bf16 %v246_v10, %v246_v10 }
 0x13d   :  { %271 = vst.msk [vmem:[%s466_s4 + $0x10] sm:$0xf] %vm266_vm2, %v262_v11 }
 0x13e   :  { %v255_v12 = vpop.f32.mrf.mxu3 }
 0x13f   :  { %v265_v13 = vpack.c.bf16 %v255_v12, %v255_v12 }
 0x141   :  { %274 = vst.msk [vmem:[%s466_s4 + $0x1c] sm:$0xf] %vm266_vm2, %v265_v13 }

// kernel: gcn2bn1lin2mlp3_forward.7
= control target key start
LH: loop header
LB: loop body
LE: loop exit
PB: predicated region body
PF: predicated region fallthrough
CT: control target
= control target key end

     0   :  { %vm25_vm0 = vcmask 261120   ;;  %v469_v2 = vmov 0.0   ;;  %vm102_vm1 = vcmask 523264   ;;  %vm265_vm2 = vcmask 64512   ;;  %s646_s1 = inlined_call_operand.vmem [shape: bf16[64,32], index: 1, kind: input, shape index: {}]   ;;  %s647_s0 = inlined_call_operand.vmem [shape: bf16[64,64], index: 0, kind: input, shape index: {}]   ;;  %s648_s2 = inlined_call_operand.vmem [shape: f32[1,32], index: 2, kind: input, shape index: {}]   ;;  %s649_s4 = inlined_call_operand.vmem [shape: f32[1,8], index: 4, kind: input, shape index: {}]   ;;  %s650_s3 = inlined_call_operand.vmem [shape: f32[32,8], index: 3, kind: input, shape index: {}]   ;;  %s651_s5 = inlined_call_operand.vmem [shape: f32[64,8], index: 5, kind: output, shape index: {}]  }
   0x1   :  { %v425_v0 = vld [vmem:[%s646_s1 + $0x18] sm:$0xff]  ;;  %v424_v1 = vld [vmem:[%s646_s1 + $0x10] sm:$0xff]  ;;  %26 = vst.msk [vmem:[#allocation2] sm:$0xff] %vm25_vm0, %v469_v2  ;;  %v423_v3 = vld [vmem:[%s646_s1 + $0x8] sm:$0xff] }
   0x2   :  { %119 = vmatpush.bf16.msra.mxu0 %v425_v0  ;;  %426 = vmatpush.bf16.msra.mxu2 %v425_v0  ;;  %27 = vst.msk [vmem:[#allocation2 + $0x8] sm:$0xff] %vm25_vm0, %v469_v2  ;;  %v422_v4 = vld [vmem:[%s646_s1] sm:$0xff]  ;;  %v420_v6 = vld [vmem:[%s647_s0 + $0x10] sm:$0xff]  ;;  %v419_v7 = vld [vmem:[%s647_s0 + $0x8] sm:$0xff] }
   0x3   :  { %28 = vst.msk [vmem:[#allocation2 + $0x10] sm:$0xff] %vm25_vm0, %v469_v2  ;;  %v418_v5 = vld [vmem:[%s647_s0] sm:$0xff]  ;;  %v421_v8 = vld [vmem:[%s647_s0 + $0x18] sm:$0xff]  ;;  %v194_v10 = vld [vmem:[%s650_s3 + $0x10] sm:$0xff] }
   0x4   :  { %29 = vst.msk [vmem:[#allocation2 + $0x18] sm:$0xff] %vm25_vm0, %v469_v2  ;;  %v195_v9 = vld [vmem:[%s650_s3 + $0x18] sm:$0xff]  ;;  %v193_v11 = vld [vmem:[%s650_s3 + $0x8] sm:$0xff]  ;;  %v192_v12 = vld [vmem:[%s650_s3] sm:$0xff] }
   0x5   :  { %30 = vst.msk [vmem:[#allocation2 + $0x20] sm:$0xff] %vm25_vm0, %v469_v2  ;;  %236 = vmatpush.msra.mxu1 %v195_v9  ;;  %430 = vmatpush.msra.mxu3 %v195_v9  ;;  %v435_v20 = vld [vmem:[%s648_s2] ss:$0 sm:$0xff] }
   0x6   :  { %120 = vmatpush.bf16.msra.mxu0 %v424_v1  ;;  %427 = vmatpush.bf16.msra.mxu2 %v424_v1  ;;  %31 = vst.msk [vmem:[#allocation2 + $0x28] sm:$0xff] %vm25_vm0, %v469_v2  ;;  %v436_v62 = vld [vmem:[%s649_s4] ss:$0 sm:$0xff] }
   0x7   :  { %32 = vst.msk [vmem:[#allocation2 + $0x30] sm:$0xff] %vm25_vm0, %v469_v2  ;;  %237 = vmatpush.msra.mxu1 %v194_v10  ;;  %431 = vmatpush.msra.mxu3 %v194_v10 }
   0x8   :  { %33 = vst.msk [vmem:[#allocation2 + $0x38] sm:$0xff] %vm25_vm0, %v469_v2  ;;  %v34_v13 = vld [vmem:[#allocation2] sm:$0xff] }
   0x9   :  { %238 = vmatpush.msra.mxu1 %v193_v11  ;;  %432 = vmatpush.msra.mxu3 %v193_v11  ;;  %v35_v18 = vld [vmem:[#allocation2 + $0x8] sm:$0xff] }
   0xa   :  { %121 = vmatpush.bf16.msra.mxu0 %v423_v3  ;;  %428 = vmatpush.bf16.msra.mxu2 %v423_v3  ;;  %v36_v28 = vld [vmem:[#allocation2 + $0x10] sm:$0xff] }
   0xb   :  { %239 = vmatpush.msra.mxu1 %v192_v12  ;;  %433 = vmatpush.msra.mxu3 %v192_v12  ;;  %v37_v37 = vld [vmem:[#allocation2 + $0x18] sm:$0xff] }
   0xc   :  { %v38_v16 = vld [vmem:[#allocation2 + $0x20] sm:$0xff] }
   0xd   :  { %v39_v25 = vld [vmem:[#allocation2 + $0x28] sm:$0xff] }
   0xe   :  { %122 = vmatpush.bf16.msra.mxu0 %v422_v4  ;;  %429 = vmatpush.bf16.msra.mxu2 %v422_v4  ;;  %v40_v34 = vld [vmem:[#allocation2 + $0x30] sm:$0xff] }
   0xf   :  { %v41_v46 = vld [vmem:[#allocation2 + $0x38] sm:$0xff] }
  0x11   :  { %406 = vmatmul.msk.bf16.vlgmr.msra.gmra.mxu0 %vm102_vm1, %v418_v5  ;;  %408 = vmatmul.msk.bf16.vlgmr.msra.gmra.mxu2 %vm102_vm1, %v420_v6 }
  0x21   :  { %407 = vmatmul.msk.bf16.gmra.mxu0 %vm102_vm1, %v419_v7  ;;  %409 = vmatmul.msk.bf16.gmra.mxu2 %vm102_vm1, %v421_v8 }
  0x8e   :  { %v124_v14 = vpop.f32.mrf.mxu0 }
  0x8f   :  { %v144_v15 = vadd.f32 %v124_v14, %v34_v13 }
  0x91   :  { %153 = vst.msk [vmem:[#allocation2] sm:$0xff] %vm25_vm0, %v144_v15 }
  0x94   :  { %v134_v17 = vpop.f32.mrf.mxu2 }
  0x95   :  { %v148_v19 = vadd.f32 %v134_v17, %v38_v16 }
  0x96   :  { %v126_v21 = vpop.f32.mrf.mxu0 }
  0x97   :  { %157 = vst.msk [vmem:[#allocation2 + $0x20] sm:$0xff] %vm25_vm0, %v148_v19  ;;  %v145_v22 = vadd.f32 %v126_v21, %v35_v18 }
  0x98   :  { %v164_v23 = vld [vmem:[#allocation2] sm:$0xff] }
  0x99   :  { %154 = vst.msk [vmem:[#allocation2 + $0x8] sm:$0xff] %vm25_vm0, %v145_v22  ;;  %v176_v24 = vadd.f32 %v435_v20, %v164_v23 }
  0x9b   :  { %v184_v26 = vmax.f32 %v176_v24, 0.0 }
  0x9c   :  { %v136_v27 = vpop.f32.mrf.mxu2 }
  0x9d   :  { %v149_v29 = vadd.f32 %v136_v27, %v39_v25  ;;  %410 = vmatmul.msk.f32.vlgmr.msra.gmra.mxu1 %vm25_vm0, %v184_v26 }
  0x9e   :  { %v129_v30 = vpop.f32.mrf.mxu0  ;;  %v168_v56 = vld [vmem:[#allocation2 + $0x20] sm:$0xff] }
  0x9f   :  { %158 = vst.msk [vmem:[#allocation2 + $0x28] sm:$0xff] %vm25_vm0, %v149_v29  ;;  %v146_v31 = vadd.f32 %v129_v30, %v36_v28  ;;  %v180_v59 = vadd.f32 %v435_v20, %v168_v56 }
  0xa0   :  { %v165_v32 = vld [vmem:[#allocation2 + $0x8] sm:$0xff] }
  0xa1   :  { %155 = vst.msk [vmem:[#allocation2 + $0x10] sm:$0xff] %vm25_vm0, %v146_v31  ;;  %v177_v33 = vadd.f32 %v435_v20, %v165_v32  ;;  %v188_v61 = vmax.f32 %v180_v59, 0.0 }
  0xa3   :  { %v185_v35 = vmax.f32 %v177_v33, 0.0 }
  0xa4   :  { %v139_v36 = vpop.f32.mrf.mxu2 }
  0xa5   :  { %v150_v38 = vadd.f32 %v139_v36, %v40_v34  ;;  %411 = vmatmul.msk.f32.gmra.mxu1 %vm25_vm0, %v185_v35 }
  0xa6   :  { %v131_v39 = vpop.f32.mrf.mxu0  ;;  %v169_v40 = vld [vmem:[#allocation2 + $0x28] sm:$0xff] }
  0xa7   :  { %159 = vst.msk [vmem:[#allocation2 + $0x30] sm:$0xff] %vm25_vm0, %v150_v38  ;;  %v147_v41 = vadd.f32 %v131_v39, %v37_v37  ;;  %v181_v42 = vadd.f32 %v435_v20, %v169_v40 }
  0xa8   :  { %v166_v43 = vld [vmem:[#allocation2 + $0x10] sm:$0xff] }
  0xa9   :  { %156 = vst.msk [vmem:[#allocation2 + $0x18] sm:$0xff] %vm25_vm0, %v147_v41  ;;  %v189_v44 = vmax.f32 %v181_v42, 0.0  ;;  %v178_v45 = vadd.f32 %v435_v20, %v166_v43 }
  0xab   :  { %415 = vmatmul.msk.f32.vlgmr.msra.gmra.mxu3 %vm25_vm0, %v189_v44  ;;  %v186_v47 = vmax.f32 %v178_v45, 0.0 }
  0xac   :  { %v141_v48 = vpop.f32.mrf.mxu2 }
  0xad   :  { %v151_v49 = vadd.f32 %v141_v48, %v41_v46  ;;  %412 = vmatmul.msk.f32.gmra.mxu1 %vm25_vm0, %v186_v47 }
  0xae   :  { %v170_v50 = vld [vmem:[#allocation2 + $0x30] sm:$0xff] }
  0xaf   :  { %160 = vst.msk [vmem:[#allocation2 + $0x38] sm:$0xff] %vm25_vm0, %v151_v49  ;;  %v182_v51 = vadd.f32 %v435_v20, %v170_v50 }
  0xb0   :  { %v167_v52 = vld [vmem:[#allocation2 + $0x18] sm:$0xff] }
  0xb1   :  { %v190_v53 = vmax.f32 %v182_v51, 0.0  ;;  %v179_v54 = vadd.f32 %v435_v20, %v167_v52 }
  0xb3   :  { %416 = vmatmul.msk.f32.gmra.mxu3 %vm25_vm0, %v190_v53  ;;  %v187_v55 = vmax.f32 %v179_v54, 0.0 }
  0xb5   :  { %413 = vmatmul.msk.f32.gmra.mxu1 %vm25_vm0, %v187_v55 }
  0xb6   :  { %v171_v57 = vld [vmem:[#allocation2 + $0x38] sm:$0xff] }
  0xb7   :  { %v183_v58 = vadd.f32 %v435_v20, %v171_v57 }
  0xb9   :  { %v191_v60 = vmax.f32 %v183_v58, 0.0 }
  0xbb   :  { %417 = vmatmul.msk.f32.gmra.mxu3 %vm25_vm0, %v191_v60 }
  0xbd   :  { %414 = vmatmul.msk.f32.gmra.mxu1 %vm25_vm0, %v188_v61 }
 0x11a   :  { %v241_v63 = vpop.f32.mrf.mxu1 }
 0x11b   :  { %v242_v0 = vadd.f32 %v436_v62, %v241_v63 }
 0x11d   :  { %v266_v1 = vsel %vm265_vm2, %v242_v0, -inf }
 0x11e   :  { %267 = vmax.xlane.f32.xlu0 %v266_v1 }
 0x122   :  { %v244_v2 = vpop.f32.mrf.mxu1 }
 0x123   :  { %v245_v3 = vadd.f32 %v436_v62, %v244_v2 }
 0x125   :  { %v269_v4 = vsel %vm265_vm2, %v245_v3, -inf }
 0x126   :  { %270 = vmax.xlane.f32.xlu0 %v269_v4 }
 0x12a   :  { %v247_v5 = vpop.f32.mrf.mxu1 }
 0x12b   :  { %v248_v6 = vadd.f32 %v436_v62, %v247_v5 }
 0x12d   :  { %v272_v7 = vsel %vm265_vm2, %v248_v6, -inf }
 0x12e   :  { %v256_v8 = vpop.f32.mrf.mxu3  ;;  %273 = vmax.xlane.f32.xlu1 %v272_v7 }
 0x12f   :  { %v257_v20 = vadd.f32 %v436_v62, %v256_v8 }
 0x131   :  { %v281_v22 = vsel %vm265_vm2, %v257_v20, -inf }
 0x132   :  { %v250_v9 = vpop.f32.mrf.mxu1 }
 0x133   :  { %v251_v10 = vadd.f32 %v436_v62, %v250_v9 }
 0x135   :  { %v275_v11 = vsel %vm265_vm2, %v251_v10, -inf }
 0x136   :  { %v259_v12 = vpop.f32.mrf.mxu3  ;;  %276 = vmax.xlane.f32.xlu1 %v275_v11 }
 0x137   :  { %v260_v13 = vadd.f32 %v436_v62, %v259_v12 }
 0x139   :  { %v284_v14 = vsel %vm265_vm2, %v260_v13, -inf }
 0x13a   :  { %285 = vmax.xlane.f32.xlu0 %v284_v14  ;;  %v253_v15 = vpop.f32.mrf.mxu1 }
 0x13b   :  { %v254_v16 = vadd.f32 %v436_v62, %v253_v15 }
 0x13d   :  { %v278_v17 = vsel %vm265_vm2, %v254_v16, -inf }
 0x13e   :  { %v262_v18 = vpop.f32.mrf.mxu3  ;;  %279 = vmax.xlane.f32.xlu2 %v278_v17 }
 0x13f   :  { %v263_v19 = vadd.f32 %v436_v62, %v262_v18 }
 0x141   :  { %v287_v21 = vsel %vm265_vm2, %v263_v19, -inf }
 0x142   :  { %288 = vmax.xlane.f32.xlu1 %v287_v21 }
 0x146   :  { %282 = vmax.xlane.f32.xlu2 %v281_v22 }
 0x191   :  { %v268_v23 = vpop.xlane.xlu0 %267 }
 0x192   :  { %v574_v24 = vsub.f32 %v242_v0, %v268_v23 }
 0x194   :  { %v298_v25 = vmul.f32 1.442695, %v574_v24 }
 0x196   :  { %437 = vpow2.f32 %v298_v25 }
 0x199   :  { %v271_v26 = vpop.xlane.xlu0 %270 }
 0x19a   :  { %v577_v27 = vsub.f32 %v245_v3, %v271_v26 }
 0x19c   :  { %v438_v28 = vpop.eup %437  ;;  %v300_v29 = vmul.f32 1.442695, %v577_v27 }
 0x19d   :  { %v314_v30 = vsel %vm265_vm2, %v438_v28, 0.0 }
 0x19e   :  { %439 = vpow2.f32 %v300_v29  ;;  %315 = vadd.xlane.f32.xlu2 %v314_v30 }
 0x1a1   :  { %v274_v31 = vpop.xlane.xlu1 %273 }
 0x1a2   :  { %v581_v32 = vsub.f32 %v248_v6, %v274_v31 }
 0x1a4   :  { %v440_v33 = vpop.eup %439  ;;  %v302_v34 = vmul.f32 1.442695, %v581_v32 }
 0x1a5   :  { %v317_v35 = vsel %vm265_vm2, %v440_v33, 0.0 }
 0x1a6   :  { %441 = vpow2.f32 %v302_v34  ;;  %318 = vadd.xlane.f32.xlu0 %v317_v35 }
 0x1a9   :  { %v277_v36 = vpop.xlane.xlu1 %276 }
 0x1aa   :  { %v585_v37 = vsub.f32 %v251_v10, %v277_v36 }
 0x1ac   :  { %v442_v38 = vpop.eup %441  ;;  %v304_v39 = vmul.f32 1.442695, %v585_v37 }
 0x1ad   :  { %v286_v40 = vpop.xlane.xlu0 %285  ;;  %v320_v41 = vsel %vm265_vm2, %v442_v38, 0.0 }
 0x1ae   :  { %443 = vpow2.f32 %v304_v39  ;;  %v589_v42 = vsub.f32 %v260_v13, %v286_v40  ;;  %321 = vadd.xlane.f32.xlu1 %v320_v41 }
 0x1b0   :  { %v310_v43 = vmul.f32 1.442695, %v589_v42 }
 0x1b1   :  { %v280_v44 = vpop.xlane.xlu2 %279 }
 0x1b2   :  { %v592_v45 = vsub.f32 %v254_v16, %v280_v44  ;;  %445 = vpow2.f32 %v310_v43 }
 0x1b4   :  { %v444_v46 = vpop.eup %443  ;;  %v306_v47 = vmul.f32 1.442695, %v592_v45 }
 0x1b5   :  { %v289_v48 = vpop.xlane.xlu1 %288  ;;  %v323_v49 = vsel %vm265_vm2, %v444_v46, 0.0 }
 0x1b6   :  { %447 = vpow2.f32 %v306_v47  ;;  %v596_v50 = vsub.f32 %v263_v19, %v289_v48  ;;  %324 = vadd.xlane.f32.xlu2 %v323_v49 }
 0x1b8   :  { %v312_v51 = vmul.f32 1.442695, %v596_v50  ;;  %v446_v53 = vpop.eup %445 }
 0x1b9   :  { %v283_v52 = vpop.xlane.xlu2 %282  ;;  %v332_v58 = vsel %vm265_vm2, %v446_v53, 0.0 }
 0x1ba   :  { %v599_v54 = vsub.f32 %v257_v20, %v283_v52  ;;  %449 = vpow2.f32 %v312_v51 }
 0x1bc   :  { %v448_v55 = vpop.eup %447  ;;  %v308_v56 = vmul.f32 1.442695, %v599_v54 }
 0x1bd   :  { %v326_v57 = vsel %vm265_vm2, %v448_v55, 0.0 }
 0x1be   :  { %451 = vpow2.f32 %v308_v56  ;;  %327 = vadd.xlane.f32.xlu0 %v326_v57  ;;  %333 = vadd.xlane.f32.xlu2 %v332_v58 }
 0x1c0   :  { %v450_v59 = vpop.eup %449 }
 0x1c1   :  { %v335_v62 = vsel %vm265_vm2, %v450_v59, 0.0 }
 0x1c4   :  { %v452_v60 = vpop.eup %451 }
 0x1c5   :  { %v329_v61 = vsel %vm265_vm2, %v452_v60, 0.0 }
 0x1c6   :  { %330 = vadd.xlane.f32.xlu1 %v329_v61  ;;  %336 = vadd.xlane.f32.xlu0 %v335_v62 }
 0x211   :  { %v316_v63 = vpop.xlane.xlu2 %315 }
 0x212   :  { %453 = vlog2.f32 %v316_v63 }
 0x218   :  { %v454_v0 = vpop.eup %453 }
 0x219   :  { %v339_v1 = vmul.f32 0.6931472, %v454_v0  ;;  %v319_v2 = vpop.xlane.xlu0 %318 }
 0x21a   :  { %455 = vlog2.f32 %v319_v2 }
 0x21b   :  { %v354_v3 = vsub.f32 %v574_v24, %v339_v1 }
 0x21d   :  { %362 = vst.msk [vmem:[%s651_s5] sm:$0xff] %vm265_vm2, %v354_v3 }
 0x220   :  { %v456_v4 = vpop.eup %455 }
 0x221   :  { %v341_v5 = vmul.f32 0.6931472, %v456_v4  ;;  %v322_v6 = vpop.xlane.xlu1 %321 }
 0x222   :  { %457 = vlog2.f32 %v322_v6 }
 0x223   :  { %v355_v7 = vsub.f32 %v577_v27, %v341_v5 }
 0x225   :  { %363 = vst.msk [vmem:[%s651_s5 + $0x8] sm:$0xff] %vm265_vm2, %v355_v7 }
 0x228   :  { %v458_v8 = vpop.eup %457 }
 0x229   :  { %v343_v9 = vmul.f32 0.6931472, %v458_v8  ;;  %v325_v10 = vpop.xlane.xlu2 %324 }
 0x22a   :  { %459 = vlog2.f32 %v325_v10 }
 0x22b   :  { %v356_v11 = vsub.f32 %v581_v32, %v343_v9 }
 0x22d   :  { %364 = vst.msk [vmem:[%s651_s5 + $0x10] sm:$0xff] %vm265_vm2, %v356_v11 }
 0x230   :  { %v460_v12 = vpop.eup %459 }
 0x231   :  { %v345_v13 = vmul.f32 0.6931472, %v460_v12  ;;  %v328_v14 = vpop.xlane.xlu0 %327  ;;  %v334_v15 = vpop.xlane.xlu2 %333 }
 0x232   :  { %461 = vlog2.f32 %v328_v14 }
 0x233   :  { %v357_v16 = vsub.f32 %v585_v37, %v345_v13  ;;  %463 = vlog2.f32 %v334_v15 }
 0x235   :  { %365 = vst.msk [vmem:[%s651_s5 + $0x18] sm:$0xff] %vm265_vm2, %v357_v16 }
 0x238   :  { %v462_v17 = vpop.eup %461 }
 0x239   :  { %v464_v18 = vpop.eup %463  ;;  %v347_v19 = vmul.f32 0.6931472, %v462_v17  ;;  %v337_v20 = vpop.xlane.xlu0 %336 }
 0x23a   :  { %v331_v21 = vpop.xlane.xlu1 %330  ;;  %v351_v22 = vmul.f32 0.6931472, %v464_v18  ;;  %465 = vlog2.f32 %v337_v20 }
 0x23b   :  { %v358_v23 = vsub.f32 %v592_v45, %v347_v19  ;;  %467 = vlog2.f32 %v331_v21 }
 0x23c   :  { %v360_v24 = vsub.f32 %v589_v42, %v351_v22 }
 0x23d   :  { %366 = vst.msk [vmem:[%s651_s5 + $0x20] sm:$0xff] %vm265_vm2, %v358_v23 }
 0x23e   :  { %368 = vst.msk [vmem:[%s651_s5 + $0x30] sm:$0xff] %vm265_vm2, %v360_v24 }
 0x240   :  { %v466_v25 = vpop.eup %465 }
 0x241   :  { %v468_v26 = vpop.eup %467  ;;  %v353_v27 = vmul.f32 0.6931472, %v466_v25 }
 0x242   :  { %v349_v28 = vmul.f32 0.6931472, %v468_v26 }
 0x243   :  { %v361_v29 = vsub.f32 %v596_v50, %v353_v27 }
 0x244   :  { %v359_v30 = vsub.f32 %v599_v54, %v349_v28 }
 0x245   :  { %369 = vst.msk [vmem:[%s651_s5 + $0x38] sm:$0xff] %vm265_vm2, %v361_v29 }
 0x246   :  { %367 = vst.msk [vmem:[%s651_s5 + $0x28] sm:$0xff] %vm265_vm2, %v359_v30 }

</bundles_post_ra>
